<compile_context>
chip_gen: v5e
topology: v5e:2x2
jax: 0.10.0
libtpu: 0.0.40
codegen_flags: <defaults>
</compile_context>

<pallas_src>
import functools

import jax
import jax.numpy as jnp
from jax.experimental import pallas as pl
from jax.experimental.pallas import tpu as pltpu


def _shift_lanes(x, off, size):
    """out[..., p] = x[..., p + off] wherever p + off stays in [0, size).

    Positions that would wrap around are garbage-by-rotation and are zeroed
    by the per-tap boundary mask in the caller.
    """
    shift = (-off) % size
    if shift == 0:
        return x
    if size % 128 == 0:
        # Dedicated XLU lane rotate (rides an otherwise idle slot).
        return pltpu.roll(x, shift=shift, axis=1)
    # Fallback for lane dims that are not a multiple of 128.
    return jnp.roll(x, shift, axis=1)


def _conv3x3_kernel(x_ref, w_ref, b_ref, m_ref, o_ref, *, H, W, Cin, Cout, Nb):
    """One block of Nb images per grid step.

    x_ref: (Nb, Cin, H*W)   input planes, spatial flattened onto lanes
    w_ref: (9, Cout, Cin)   per-tap weights, t = kh*3 + kw
    b_ref: (Cout, 1)        bias column
    m_ref: (9, 1, H*W)      per-tap 0/1 boundary masks
    o_ref: (Nb, Cout, H*W)  NCHW output (spatial flattened, lane-dense store)
    """
    HW = H * W
    # Tap order matches w_ref / m_ref: t = kh*3 + kw, (dy, dx) = (kh-1, kw-1).
    offsets = [dy * W + dx for dy in (-1, 0, 1) for dx in (-1, 0, 1)]
    bias = b_ref[...]                                    # (Cout, 1)

    for nb in range(Nb):
        x_nb = x_ref[nb]                                 # (Cin, HW), f32
        acc = jnp.zeros((Cout, HW), dtype=jnp.float32)
        for t, off in enumerate(offsets):
            if off == 0:
                tap = x_nb                               # centre tap: no shift/mask
            else:
                tap = _shift_lanes(x_nb, off, HW) * m_ref[t]   # (Cin, HW)
            acc = acc + jnp.dot(w_ref[t], tap,
                                preferred_element_type=jnp.float32)
        o_ref[nb] = (acc + bias).astype(o_ref.dtype)


def _boundary_masks(H, W, dtype):
    """(9, 1, H*W) masks: 1 where the tap (dy, dx) reads inside the image."""
    hh = jnp.arange(H, dtype=jnp.int32).reshape(H, 1)
    ww = jnp.arange(W, dtype=jnp.int32).reshape(1, W)
    rows = []
    for dy in (-1, 0, 1):
        for dx in (-1, 0, 1):
            valid = ((hh + dy >= 0) & (hh + dy < H) &
                     (ww + dx >= 0) & (ww + dx < W))
            rows.append(valid.reshape(1, H * W))
    return jnp.stack(rows).astype(dtype)


def _pick_batch_block(N, HW):
    """Images per grid step: enough per-step work (~>=1024 output columns to
    amortize ~0.35us/step overhead) while keeping >= 2 grid steps when
    possible so v7x's two TensorCores both get fed."""
    target = max(1, -(-1024 // HW))          # ceil(1024 / HW)
    best = 1
    for d in range(1, N + 1):
        if N % d:
            continue
        keeps_parallel = (N // d) >= 2
        if d <= target and (keeps_parallel or N == 1):
            best = max(best, d)
    return best


def conv2d_3x3(x_nchw, weight, bias):
    """x_nchw: (N, 3, H, W) f32, weight: (16, 3, 3, 3), bias: (16,) -> NCHW."""
    N, Cin, H, W = x_nchw.shape
    Cout = weight.shape[0]
    HW = H * W

    Nb = _pick_batch_block(N, HW)
    grid = (N // Nb,)

    # All wrapper-side transforms are either metadata-only reshapes (x, out)
    # or on tiny parameter tensors (weights/bias/masks).
    x_flat = x_nchw.reshape(N, Cin, HW)
    w_taps = jnp.transpose(weight, (2, 3, 0, 1)).reshape(9, Cout, Cin)
    b_col = bias.reshape(Cout, 1)
    masks = _boundary_masks(H, W, x_nchw.dtype)          # (9, 1, HW)

    kernel = functools.partial(_conv3x3_kernel,
                               H=H, W=W, Cin=Cin, Cout=Cout, Nb=Nb)

    flops = 2 * N * HW * 9 * Cin * Cout
    bytes_accessed = 4 * (N * Cin * HW + N * Cout * HW
                          + 9 * Cout * Cin + 9 * HW + Cout)

    out_flat = pl.pallas_call(
        kernel,
        out_shape=jax.ShapeDtypeStruct((N, Cout, HW), x_nchw.dtype),
        grid_spec=pltpu.PrefetchScalarGridSpec(
            num_scalar_prefetch=0,
            grid=grid,
            in_specs=[
                pl.BlockSpec((Nb, Cin, HW), lambda n: (n, 0, 0)),    # x
                pl.BlockSpec((9, Cout, Cin), lambda n: (0, 0, 0)),   # weights (DMA'd once)
                pl.BlockSpec((Cout, 1), lambda n: (0, 0)),           # bias    (DMA'd once)
                pl.BlockSpec((9, 1, HW), lambda n: (0, 0, 0)),       # masks   (DMA'd once)
            ],
            out_specs=pl.BlockSpec((Nb, Cout, HW), lambda n: (n, 0, 0)),
        ),
        compiler_params=pltpu.CompilerParams(
            dimension_semantics=("parallel",),
            vmem_limit_bytes=48 * 1024 * 1024,
        ),
        cost_estimate=pl.CostEstimate(
            flops=flops, transcendentals=0, bytes_accessed=bytes_accessed),
    )(x_flat, w_taps, b_col, masks)

    # Contiguous split of the last dim: metadata-only, no HBM pass.
    return out_flat.reshape(N, Cout, H, W)


if __name__ == "__main__":
    key = jax.random.PRNGKey(0)
    kx, kw, kb = jax.random.split(key, 3)

    # Small shapes consistent with Conv2d(3, 16, 3, 1, 1).
    N, Cin, H, W, Cout = 2, 3, 16, 16, 16
    x = jax.random.normal(kx, (N, Cin, H, W), dtype=jnp.float32)

    # Deterministic parameter init (PyTorch-default-like uniform bounds).
    fan_in = Cin * 3 * 3
    bound = 1.0 / (fan_in ** 0.5)
    weight = jax.random.uniform(kw, (Cout, Cin, 3, 3), jnp.float32,
                                minval=-bound, maxval=bound)
    bias = jax.random.uniform(kb, (Cout,), jnp.float32,
                              minval=-bound, maxval=bound)

    out = conv2d_3x3(x, weight, bias)
    jax.block_until_ready(out)

    # Cross-check against lax conv for correctness.
    ref = jax.lax.conv_general_dilated(
        x, weight, window_strides=(1, 1), padding=((1, 1), (1, 1)),
        dimension_numbers=("NCHW", "OIHW", "NCHW"),
    ) + bias.reshape(1, Cout, 1, 1)
    assert out.shape == (N, Cout, H, W)
    assert jnp.allclose(out, ref, atol=1e-4, rtol=1e-4)

    print("KERNEL_OK")
</pallas_src>

<mosaic_0001>
module attributes {stable_mosaic.version = 11 : i64} {
  func.func @_conv3x3_kernel(%arg0: i32, %arg1: memref<1x3x256xf32, #tpu.memory_space<vmem>>, %arg2: memref<9x16x3xf32, #tpu.memory_space<vmem>>, %arg3: memref<16x1xf32, #tpu.memory_space<vmem>>, %arg4: memref<9x1x256xf32, #tpu.memory_space<vmem>>, %arg5: memref<1x16x256xf32, #tpu.memory_space<vmem>>) attributes {dimension_semantics = [#tpu.dimension_semantics<parallel>], iteration_bounds = array<i64: 2>, scalar_prefetch = 0 : i64, scratch_operands = 0 : i64, tpu.core_type = #tpu.core_type<tc>, window_params = [{transform_indices = @transform_0, window_bounds = array<i64: 1, 3, 256>}, {pipeline_mode = #tpu.pipeline_mode<synchronous>, transform_indices = @transform_1, window_bounds = array<i64: 9, 16, 3>}, {pipeline_mode = #tpu.pipeline_mode<synchronous>, transform_indices = @transform_2, window_bounds = array<i64: 16, 1>}, {pipeline_mode = #tpu.pipeline_mode<synchronous>, transform_indices = @transform_3, window_bounds = array<i64: 9, 1, 256>}, {transform_indices = @transform_4, window_bounds = array<i64: 1, 16, 256>}]} {
    %c0 = arith.constant 0 : index
    %c0_0 = arith.constant 0 : index
    %0 = vector.load %arg3[%c0, %c0_0] : memref<16x1xf32, #tpu.memory_space<vmem>>, vector<16x1xf32>
    %c0_1 = arith.constant 0 : index
    %c0_2 = arith.constant 0 : index
    %c0_3 = arith.constant 0 : index
    %1 = vector.load %arg1[%c0_1, %c0_2, %c0_3] : memref<1x3x256xf32, #tpu.memory_space<vmem>>, vector<1x3x256xf32>
    %2 = vector.shape_cast %1 : vector<1x3x256xf32> to vector<3x256xf32>
    %cst = arith.constant 0.000000e+00 : f32
    %3 = vector.broadcast %cst : f32 to vector<16x256xf32>
    %c17_i32 = arith.constant 17 : i32
    %4 = tpu.dynamic_rotate %2 by %c17_i32 dim 1 : vector<3x256xf32>, i32 -> vector<3x256xf32>
    %c0_4 = arith.constant 0 : index
    %c0_5 = arith.constant 0 : index
    %c0_6 = arith.constant 0 : index
    %5 = vector.load %arg4[%c0_4, %c0_5, %c0_6] : memref<9x1x256xf32, #tpu.memory_space<vmem>>, vector<1x1x256xf32>
    %6 = vector.shape_cast %5 : vector<1x1x256xf32> to vector<1x256xf32>
    %7 = vector.broadcast %6 : vector<1x256xf32> to vector<3x256xf32>
    %8 = arith.mulf %4, %7 : vector<3x256xf32>
    %c0_7 = arith.constant 0 : index
    %c0_8 = arith.constant 0 : index
    %c0_9 = arith.constant 0 : index
    %9 = vector.load %arg2[%c0_7, %c0_8, %c0_9] : memref<9x16x3xf32, #tpu.memory_space<vmem>>, vector<1x16x3xf32>
    %10 = vector.shape_cast %9 : vector<1x16x3xf32> to vector<16x3xf32>
    %cst_10 = arith.constant dense<0.000000e+00> : vector<16x256xf32>
    %11 = tpu.matmul %10, %8, %cst_10 {dimension_numbers = #tpu.dot_dimension_numbers<[1], [0], [0], [1], [0, 0, 1, 1], [], []>} : vector<16x3xf32>, vector<3x256xf32>, vector<16x256xf32> -> vector<16x256xf32>
    %12 = arith.addf %3, %11 : vector<16x256xf32>
    %c16_i32 = arith.constant 16 : i32
    %13 = tpu.dynamic_rotate %2 by %c16_i32 dim 1 : vector<3x256xf32>, i32 -> vector<3x256xf32>
    %c1 = arith.constant 1 : index
    %c0_11 = arith.constant 0 : index
    %c0_12 = arith.constant 0 : index
    %14 = vector.load %arg4[%c1, %c0_11, %c0_12] : memref<9x1x256xf32, #tpu.memory_space<vmem>>, vector<1x1x256xf32>
    %15 = vector.shape_cast %14 : vector<1x1x256xf32> to vector<1x256xf32>
    %16 = vector.broadcast %15 : vector<1x256xf32> to vector<3x256xf32>
    %17 = arith.mulf %13, %16 : vector<3x256xf32>
    %c1_13 = arith.constant 1 : index
    %c0_14 = arith.constant 0 : index
    %c0_15 = arith.constant 0 : index
    %18 = vector.load %arg2[%c1_13, %c0_14, %c0_15] : memref<9x16x3xf32, #tpu.memory_space<vmem>>, vector<1x16x3xf32>
    %19 = vector.shape_cast %18 : vector<1x16x3xf32> to vector<16x3xf32>
    %cst_16 = arith.constant dense<0.000000e+00> : vector<16x256xf32>
    %20 = tpu.matmul %19, %17, %cst_16 {dimension_numbers = #tpu.dot_dimension_numbers<[1], [0], [0], [1], [0, 0, 1, 1], [], []>} : vector<16x3xf32>, vector<3x256xf32>, vector<16x256xf32> -> vector<16x256xf32>
    %21 = arith.addf %12, %20 : vector<16x256xf32>
    %c15_i32 = arith.constant 15 : i32
    %22 = tpu.dynamic_rotate %2 by %c15_i32 dim 1 : vector<3x256xf32>, i32 -> vector<3x256xf32>
    %c2 = arith.constant 2 : index
    %c0_17 = arith.constant 0 : index
    %c0_18 = arith.constant 0 : index
    %23 = vector.load %arg4[%c2, %c0_17, %c0_18] : memref<9x1x256xf32, #tpu.memory_space<vmem>>, vector<1x1x256xf32>
    %24 = vector.shape_cast %23 : vector<1x1x256xf32> to vector<1x256xf32>
    %25 = vector.broadcast %24 : vector<1x256xf32> to vector<3x256xf32>
    %26 = arith.mulf %22, %25 : vector<3x256xf32>
    %c2_19 = arith.constant 2 : index
    %c0_20 = arith.constant 0 : index
    %c0_21 = arith.constant 0 : index
    %27 = vector.load %arg2[%c2_19, %c0_20, %c0_21] : memref<9x16x3xf32, #tpu.memory_space<vmem>>, vector<1x16x3xf32>
    %28 = vector.shape_cast %27 : vector<1x16x3xf32> to vector<16x3xf32>
    %cst_22 = arith.constant dense<0.000000e+00> : vector<16x256xf32>
    %29 = tpu.matmul %28, %26, %cst_22 {dimension_numbers = #tpu.dot_dimension_numbers<[1], [0], [0], [1], [0, 0, 1, 1], [], []>} : vector<16x3xf32>, vector<3x256xf32>, vector<16x256xf32> -> vector<16x256xf32>
    %30 = arith.addf %21, %29 : vector<16x256xf32>
    %c1_i32 = arith.constant 1 : i32
    %31 = tpu.dynamic_rotate %2 by %c1_i32 dim 1 : vector<3x256xf32>, i32 -> vector<3x256xf32>
    %c3 = arith.constant 3 : index
    %c0_23 = arith.constant 0 : index
    %c0_24 = arith.constant 0 : index
    %32 = vector.load %arg4[%c3, %c0_23, %c0_24] : memref<9x1x256xf32, #tpu.memory_space<vmem>>, vector<1x1x256xf32>
    %33 = vector.shape_cast %32 : vector<1x1x256xf32> to vector<1x256xf32>
    %34 = vector.broadcast %33 : vector<1x256xf32> to vector<3x256xf32>
    %35 = arith.mulf %31, %34 : vector<3x256xf32>
    %c3_25 = arith.constant 3 : index
    %c0_26 = arith.constant 0 : index
    %c0_27 = arith.constant 0 : index
    %36 = vector.load %arg2[%c3_25, %c0_26, %c0_27] : memref<9x16x3xf32, #tpu.memory_space<vmem>>, vector<1x16x3xf32>
    %37 = vector.shape_cast %36 : vector<1x16x3xf32> to vector<16x3xf32>
    %cst_28 = arith.constant dense<0.000000e+00> : vector<16x256xf32>
    %38 = tpu.matmul %37, %35, %cst_28 {dimension_numbers = #tpu.dot_dimension_numbers<[1], [0], [0], [1], [0, 0, 1, 1], [], []>} : vector<16x3xf32>, vector<3x256xf32>, vector<16x256xf32> -> vector<16x256xf32>
    %39 = arith.addf %30, %38 : vector<16x256xf32>
    %c4 = arith.constant 4 : index
    %c0_29 = arith.constant 0 : index
    %c0_30 = arith.constant 0 : index
    %40 = vector.load %arg2[%c4, %c0_29, %c0_30] : memref<9x16x3xf32, #tpu.memory_space<vmem>>, vector<1x16x3xf32>
    %41 = vector.shape_cast %40 : vector<1x16x3xf32> to vector<16x3xf32>
    %cst_31 = arith.constant dense<0.000000e+00> : vector<16x256xf32>
    %42 = tpu.matmul %41, %2, %cst_31 {dimension_numbers = #tpu.dot_dimension_numbers<[1], [0], [0], [1], [0, 0, 1, 1], [], []>} : vector<16x3xf32>, vector<3x256xf32>, vector<16x256xf32> -> vector<16x256xf32>
    %43 = arith.addf %39, %42 : vector<16x256xf32>
    %c255_i32 = arith.constant 255 : i32
    %44 = tpu.dynamic_rotate %2 by %c255_i32 dim 1 : vector<3x256xf32>, i32 -> vector<3x256xf32>
    %c5 = arith.constant 5 : index
    %c0_32 = arith.constant 0 : index
    %c0_33 = arith.constant 0 : index
    %45 = vector.load %arg4[%c5, %c0_32, %c0_33] : memref<9x1x256xf32, #tpu.memory_space<vmem>>, vector<1x1x256xf32>
    %46 = vector.shape_cast %45 : vector<1x1x256xf32> to vector<1x256xf32>
    %47 = vector.broadcast %46 : vector<1x256xf32> to vector<3x256xf32>
    %48 = arith.mulf %44, %47 : vector<3x256xf32>
    %c5_34 = arith.constant 5 : index
    %c0_35 = arith.constant 0 : index
    %c0_36 = arith.constant 0 : index
    %49 = vector.load %arg2[%c5_34, %c0_35, %c0_36] : memref<9x16x3xf32, #tpu.memory_space<vmem>>, vector<1x16x3xf32>
    %50 = vector.shape_cast %49 : vector<1x16x3xf32> to vector<16x3xf32>
    %cst_37 = arith.constant dense<0.000000e+00> : vector<16x256xf32>
    %51 = tpu.matmul %50, %48, %cst_37 {dimension_numbers = #tpu.dot_dimension_numbers<[1], [0], [0], [1], [0, 0, 1, 1], [], []>} : vector<16x3xf32>, vector<3x256xf32>, vector<16x256xf32> -> vector<16x256xf32>
    %52 = arith.addf %43, %51 : vector<16x256xf32>
    %c241_i32 = arith.constant 241 : i32
    %53 = tpu.dynamic_rotate %2 by %c241_i32 dim 1 : vector<3x256xf32>, i32 -> vector<3x256xf32>
    %c6 = arith.constant 6 : index
    %c0_38 = arith.constant 0 : index
    %c0_39 = arith.constant 0 : index
    %54 = vector.load %arg4[%c6, %c0_38, %c0_39] : memref<9x1x256xf32, #tpu.memory_space<vmem>>, vector<1x1x256xf32>
    %55 = vector.shape_cast %54 : vector<1x1x256xf32> to vector<1x256xf32>
    %56 = vector.broadcast %55 : vector<1x256xf32> to vector<3x256xf32>
    %57 = arith.mulf %53, %56 : vector<3x256xf32>
    %c6_40 = arith.constant 6 : index
    %c0_41 = arith.constant 0 : index
    %c0_42 = arith.constant 0 : index
    %58 = vector.load %arg2[%c6_40, %c0_41, %c0_42] : memref<9x16x3xf32, #tpu.memory_space<vmem>>, vector<1x16x3xf32>
    %59 = vector.shape_cast %58 : vector<1x16x3xf32> to vector<16x3xf32>
    %cst_43 = arith.constant dense<0.000000e+00> : vector<16x256xf32>
    %60 = tpu.matmul %59, %57, %cst_43 {dimension_numbers = #tpu.dot_dimension_numbers<[1], [0], [0], [1], [0, 0, 1, 1], [], []>} : vector<16x3xf32>, vector<3x256xf32>, vector<16x256xf32> -> vector<16x256xf32>
    %61 = arith.addf %52, %60 : vector<16x256xf32>
    %c240_i32 = arith.constant 240 : i32
    %62 = tpu.dynamic_rotate %2 by %c240_i32 dim 1 : vector<3x256xf32>, i32 -> vector<3x256xf32>
    %c7 = arith.constant 7 : index
    %c0_44 = arith.constant 0 : index
    %c0_45 = arith.constant 0 : index
    %63 = vector.load %arg4[%c7, %c0_44, %c0_45] : memref<9x1x256xf32, #tpu.memory_space<vmem>>, vector<1x1x256xf32>
    %64 = vector.shape_cast %63 : vector<1x1x256xf32> to vector<1x256xf32>
    %65 = vector.broadcast %64 : vector<1x256xf32> to vector<3x256xf32>
    %66 = arith.mulf %62, %65 : vector<3x256xf32>
    %c7_46 = arith.constant 7 : index
    %c0_47 = arith.constant 0 : index
    %c0_48 = arith.constant 0 : index
    %67 = vector.load %arg2[%c7_46, %c0_47, %c0_48] : memref<9x16x3xf32, #tpu.memory_space<vmem>>, vector<1x16x3xf32>
    %68 = vector.shape_cast %67 : vector<1x16x3xf32> to vector<16x3xf32>
    %cst_49 = arith.constant dense<0.000000e+00> : vector<16x256xf32>
    %69 = tpu.matmul %68, %66, %cst_49 {dimension_numbers = #tpu.dot_dimension_numbers<[1], [0], [0], [1], [0, 0, 1, 1], [], []>} : vector<16x3xf32>, vector<3x256xf32>, vector<16x256xf32> -> vector<16x256xf32>
    %70 = arith.addf %61, %69 : vector<16x256xf32>
    %c239_i32 = arith.constant 239 : i32
    %71 = tpu.dynamic_rotate %2 by %c239_i32 dim 1 : vector<3x256xf32>, i32 -> vector<3x256xf32>
    %c8 = arith.constant 8 : index
    %c0_50 = arith.constant 0 : index
    %c0_51 = arith.constant 0 : index
    %72 = vector.load %arg4[%c8, %c0_50, %c0_51] : memref<9x1x256xf32, #tpu.memory_space<vmem>>, vector<1x1x256xf32>
    %73 = vector.shape_cast %72 : vector<1x1x256xf32> to vector<1x256xf32>
    %74 = vector.broadcast %73 : vector<1x256xf32> to vector<3x256xf32>
    %75 = arith.mulf %71, %74 : vector<3x256xf32>
    %c8_52 = arith.constant 8 : index
    %c0_53 = arith.constant 0 : index
    %c0_54 = arith.constant 0 : index
    %76 = vector.load %arg2[%c8_52, %c0_53, %c0_54] : memref<9x16x3xf32, #tpu.memory_space<vmem>>, vector<1x16x3xf32>
    %77 = vector.shape_cast %76 : vector<1x16x3xf32> to vector<16x3xf32>
    %cst_55 = arith.constant dense<0.000000e+00> : vector<16x256xf32>
    %78 = tpu.matmul %77, %75, %cst_55 {dimension_numbers = #tpu.dot_dimension_numbers<[1], [0], [0], [1], [0, 0, 1, 1], [], []>} : vector<16x3xf32>, vector<3x256xf32>, vector<16x256xf32> -> vector<16x256xf32>
    %79 = arith.addf %70, %78 : vector<16x256xf32>
    %80 = vector.broadcast %0 : vector<16x1xf32> to vector<16x256xf32>
    %81 = arith.addf %79, %80 : vector<16x256xf32>
    %c0_56 = arith.constant 0 : index
    %c0_57 = arith.constant 0 : index
    %c0_58 = arith.constant 0 : index
    %82 = vector.load %arg5[%c0_56, %c0_57, %c0_58] : memref<1x16x256xf32, #tpu.memory_space<vmem>>, vector<1x16x256xf32>
    %83 = vector.shape_cast %82 : vector<1x16x256xf32> to vector<16x256xf32>
    %84 = vector.shape_cast %81 : vector<16x256xf32> to vector<1x16x256xf32>
    tpu.vector_store %arg5[%c0_56, %c0_57, %c0_58], %84 {strides = array<i32>} : memref<1x16x256xf32, #tpu.memory_space<vmem>>, vector<1x16x256xf32>,
    return
  }
  func.func @transform_0(%arg0: i32) -> (i32, i32, i32) {
    %c0_i32 = arith.constant 0 : i32
    %c0_i32_0 = arith.constant 0 : i32
    %c0_i32_1 = arith.constant 0 : i32
    return %arg0, %c0_i32, %c0_i32_0 : i32, i32, i32
  }
  func.func @transform_1(%arg0: i32) -> (i32, i32, i32) {
    %c0_i32 = arith.constant 0 : i32
    %c0_i32_0 = arith.constant 0 : i32
    %c0_i32_1 = arith.constant 0 : i32
    %c0_i32_2 = arith.constant 0 : i32
    return %c0_i32, %c0_i32_0, %c0_i32_1 : i32, i32, i32
  }
  func.func @transform_2(%arg0: i32) -> (i32, i32) {
    %c0_i32 = arith.constant 0 : i32
    %c0_i32_0 = arith.constant 0 : i32
    %c0_i32_1 = arith.constant 0 : i32
    return %c0_i32, %c0_i32_0 : i32, i32
  }
  func.func @transform_3(%arg0: i32) -> (i32, i32, i32) {
    %c0_i32 = arith.constant 0 : i32
    %c0_i32_0 = arith.constant 0 : i32
    %c0_i32_1 = arith.constant 0 : i32
    %c0_i32_2 = arith.constant 0 : i32
    return %c0_i32, %c0_i32_0, %c0_i32_1 : i32, i32, i32
  }
  func.func @transform_4(%arg0: i32) -> (i32, i32, i32) {
    %c0_i32 = arith.constant 0 : i32
    %c0_i32_0 = arith.constant 0 : i32
    %c0_i32_1 = arith.constant 0 : i32
    return %arg0, %c0_i32, %c0_i32_0 : i32, i32, i32
  }
}

</mosaic_0001>

<bundles_post_ra>
// kernel: tpu_custom_call.1
= control target key start
LH: loop header
LB: loop body
LE: loop exit
PB: predicated region body
PF: predicated region fallthrough
CT: control target
= control target key end

     0   :  { %9 = vsyncpa [#allocation3], 0  ;;  %s1536_s0 = inlined_call_operand.vmem [shape: f32[2,3,256], index: 0, kind: input, shape index: {}]   ;;  %s1537_s1 = inlined_call_operand.vmem [shape: f32[9,16,3], index: 1, kind: input, shape index: {}]   ;;  %s1538_s2 = inlined_call_operand.vmem [shape: f32[16,1], index: 2, kind: input, shape index: {}]   ;;  %s1539_s3 = inlined_call_operand.vmem [shape: f32[9,1,256], index: 3, kind: input, shape index: {}]   ;;  %s1540_s4 = inlined_call_operand.hbm [shape: f32[2,16,256], index: 4, kind: output, shape index: {}]  }
   0x1   :  { %11 = vsyncpa [#allocation3 + $0x1], 0  ;;  %s1288_s15 = smov 0   ;;  %s1290_s16 = smov 0  }
   0x2   :  { %s1292_s17 = smov 0   ;;  %s1294_s18 = smov 0  }
   0x3 LB: > { %s1309_s19 = sadd.s32 4294967295, %s1251_s18   ;;  %s1044_s20 = sadd.s32 4294967294, %s1251_s18   ;;  %s1251_s18 = sphi %s1294_s18, %s1546_s18   ;;  %s1247_s17 = sphi %s1292_s17, %s1545_s17   ;;  %s1243_s16 = sphi %s1290_s16, %s1544_s16   ;;  %s1239_s15 = sphi %s1288_s15, %s1543_s15  }
   0x4   : > { %s1313_s21 = sadd.s32 1, %s1251_s18   ;;  %s113_s22 = sadd.s32 1, %s1247_s17 }
   0x5   : > { %s110_s23 = ssub.s32 %s1251_s18, %s1313_s21  ;;  %p123_p0 = scmp.ne.s32.totalorder %s1247_s17, %s1243_s16 }
   0x6   : > { %p111_p1 = scmp.eq.s32.totalorder %s110_s23, 0  ;;  %p124_p2 = scmp.eq.s32.totalorder %s1309_s19, 1 }
   0x7   : > { %p129_p3 = scmp.ne.s32.totalorder %s1243_s16, %s1239_s15  ;;  %p130_p4 = scmp.eq.s32.totalorder %s1044_s20, 1 }
   0x8   : > { %s1324_s24 = scalar_select %p111_p1, %s1247_s17, %s113_s22  }
   0x9   : > { %p1326_p5 = por %p124_p2, %p123_p0  ;;  %p1330_p6 = por %p130_p4, %p129_p3 }
   0xa   : > { %p1047_p7 = scmp.ge.s32.totalorder %s1251_s18, 1  ;;  %p165_p8 = scmp.lt.s32.totalorder %s1251_s18, 3 }
   0xc   : > { %p166_p9 = pnand %p1047_p7, %p165_p8 }
   0xd   : > { %p191_p10 = scmp.lt.s32.totalorder (!%p166_p9), %s1309_s19, 1  ;;  %s1253_s6 = smov (!%p166_p9), 17  }
   0xe   : > { %169 = sbr.rel (%p166_p9) target bundleno = 375 (0x177), region = 36  ;;  %s1254_s7 = smov (!%p166_p9), 16  }
   0xf   : > { %s1255_s8 = smov (!%p166_p9), 15   ;;  %s1256_s9 = smov (!%p166_p9), 1  }
  0x10   : > { %s1257_s10 = smov (!%p166_p9), 127   ;;  %s1258_s11 = smov (!%p166_p9), 113  }
  0x11   : > { %s1259_s12 = smov (!%p166_p9), 112   ;;  %s1260_s13 = smov (!%p166_p9), 111  }
  0x13   : > { %s192_s27 = scalar_select %p191_p10, %s1309_s19, 1  ;;  %v209_v21 = vlaneseq  ;;  %v1051_v24 = vld [vmem:[%s1539_s3 + $0x2] sm:$0x3]  ;;  %v214_v25 = vld [vmem:[%s1539_s3] sm:$0x3]  ;;  %vm255_vm3 = vcmask 1042432  }
  0x14   : > { %v1066_v26 = vld [vmem:[%s1539_s3 + $0x4] sm:$0x3]  ;;  %v239_v29 = vperm.slane %v1051_v24, 0  ;;  %v240_v30 = vperm.slane %v1051_v24, 1  ;;  %v216_v31 = vperm.slane %v214_v25, 0  ;;  %v217_v32 = vperm.slane %v214_v25, 1 }
  0x15   : > { %s1133_s28 = sshll.u32 %s192_s27, 3  ;;  %v1347_v23 = vand.u32 127, %v209_v21  ;;  %v381_v33 = vperm.slane %v1066_v26, 0  ;;  %v382_v37 = vperm.slane %v1066_v26, 1  ;;  %v1053_v46 = vld [vmem:[%s1537_s1 + $0x18] sm:$0xff]  ;;  %vm248_vm4 = vcmask 23552  }
  0x16   : > { %s195_s5 = scalar_lea.vmem %s1536_s0, %s1133_s28  ;;  %v1075_v47 = vld [vmem:[%s1539_s3 + $0x6] sm:$0x3]  ;;  %v1052_v52 = vld [vmem:[%s1537_s1 + $0x10] sm:$0xff]  ;;  %v223_v61 = vld [vmem:[%s1537_s1 + $0x8] sm:$0xff]  ;;  %s1209_s28 = scalar_lea.hbm %s1540_s4, 64 }
  0x17   : > { %v198_v0 = vld [vmem:[%s195_s5] sm:$0x77]  ;;  %vm211_vm0 = vcmp.lt.s32.totalorder %v1347_v23, 17  ;;  %vm233_vm1 = vcmp.lt.s32.totalorder %v1347_v23, 16  ;;  %vm375_vm2 = vcmp.lt.s32.totalorder %v1347_v23, 15  ;;  %vm461_vm5 = vcmp.lt.s32.totalorder %v1347_v23, 1 }
  0x18   : > { %200 = vst [vmem:[#allocation1] ss:$2 sm:$0xff] %v198_v0  ;;  %v467_v50 = vperm.slane %v1075_v47, 0  ;;  %v468_v51 = vperm.slane %v1075_v47, 1  ;;  %v222_v59 = vld [vmem:[%s1537_s1] sm:$0xff]  ;;  %vm613_vm6 = vcmp.lt.s32.totalorder %v1347_v23, 127 }
  0x19   : > { %v1067_v60 = vld [vmem:[%s1537_s1 + $0x20] sm:$0xff]  ;;  %v1092_v62 = vld [vmem:[%s1539_s3 + $0xa] sm:$0x3]  ;;  %vm699_vm7 = vcmp.lt.s32.totalorder %v1347_v23, 113  ;;  %vm785_vm8 = vcmp.lt.s32.totalorder %v1347_v23, 112  ;;  %vm871_vm9 = vcmp.lt.s32.totalorder %v1347_v23, 111 }
  0x1a   : > { %v1085_v24 = vld [vmem:[%s1537_s1 + $0x48] sm:$0xff]  ;;  %v1094_v23 = vld [vmem:[%s1537_s1 + $0x58] sm:$0xff]  ;;  %v1120_v47 = vld [vmem:[%s1537_s1 + $0x80] sm:$0xff]  ;;  %s188_s5 = sand.u32 1, %s1243_s16  }
  0x1b   : > { %s967_s14 = scalar_lea.sflag [#allocation3], %s188_s5 }
  0x1f   : > { %v201_v1 = vld.sshfl [vmem:[#allocation1] sm:$0xff pattern:$0x75316420]  ;;  %v202_v2 = vld.sshfl [vmem:[#allocation1 + $0x8] sm:$0xff pattern:$0x75316420] }
  0x20   : > { %205 = vrot.lane.b32.xlu1 %v201_v1, %s1253_s6  ;;  %224 = vst [vmem:[#allocation1] ss:$2 sm:$0xff] %v198_v0  ;;  %v620_v1 = vperm.slane %v1092_v62, 1 }
  0x27   : > { %v225_v3 = vld.sshfl [vmem:[#allocation1] sm:$0xff pattern:$0x75316420]  ;;  %v226_v4 = vld.sshfl [vmem:[#allocation1 + $0x8] sm:$0xff pattern:$0x75316420] }
  0x28   : > { %229 = vrot.lane.b32.xlu0 %v225_v3, %s1254_s7  ;;  %207 = vrot.lane.b32.xlu1 %v202_v2, %s1253_s6  ;;  %366 = vst [vmem:[#allocation1] ss:$2 sm:$0xff] %v198_v0  ;;  %v1068_v2 = vld [vmem:[%s1537_s1 + $0x28] sm:$0xff]  ;;  %s1048_s6 = sshll.u32 %s188_s5, 5 }
  0x2f   : > { %v367_v5 = vld.sshfl [vmem:[#allocation1] sm:$0xff pattern:$0x75316420]  ;;  %v368_v6 = vld.sshfl [vmem:[#allocation1 + $0x8] sm:$0xff pattern:$0x75316420] }
  0x30   : > { %231 = vrot.lane.b32.xlu0 %v226_v4, %s1254_s7  ;;  %452 = vst [vmem:[#allocation1] ss:$2 sm:$0xff] %v198_v0  ;;  %371 = vrot.lane.b32.xlu2 %v367_v5, %s1255_s8 }
  0x37   : > { %v454_v7 = vld.sshfl [vmem:[#allocation1 + $0x8] sm:$0xff pattern:$0x75316420]  ;;  %v453_v8 = vld.sshfl [vmem:[#allocation1] sm:$0xff pattern:$0x75316420] }
  0x38   : > { %459 = vrot.lane.b32.xlu1 %v454_v7, %s1256_s9  ;;  %457 = vrot.lane.b32.xlu0 %v453_v8, %s1256_s9  ;;  %541 = vst [vmem:[#allocation1] ss:$2 sm:$0xff] %v198_v0  ;;  %v1076_v8 = vld [vmem:[%s1537_s1 + $0x30] sm:$0xff]  ;;  %s190_s9 = scalar_lea.vmem [#allocation2], %s1048_s6 }
  0x39   : > { %373 = vrot.lane.b32.xlu2 %v368_v6, %s1255_s8  ;;  %s1134_s8 = sshll.u32 %s1309_s19, 5 }
  0x3f   : > { %v1343_v9 = vld.sshfl [vmem:[#allocation1] sm:$0xff pattern:$0x75316420]  ;;  %v1345_v10 = vld.sshfl [vmem:[#allocation1 + $0x8] sm:$0xff pattern:$0x75316420] }
  0x40   : > { %604 = vst [vmem:[#allocation1] ss:$2 sm:$0xff] %v198_v0 }
  0x47   : > { %v606_v11 = vld.sshfl [vmem:[#allocation1 + $0x8] sm:$0xff pattern:$0x75316420]  ;;  %v605_v12 = vld.sshfl [vmem:[#allocation1] sm:$0xff pattern:$0x75316420] }
  0x48   : > { %611 = vrot.lane.b32.xlu0 %v606_v11, %s1257_s10  ;;  %690 = vst [vmem:[#allocation1] ss:$2 sm:$0xff] %v198_v0  ;;  %609 = vrot.lane.b32.xlu2 %v605_v12, %s1257_s10 }
  0x4f   : > { %v691_v13 = vld.sshfl [vmem:[#allocation1] sm:$0xff pattern:$0x75316420]  ;;  %v692_v14 = vld.sshfl [vmem:[#allocation1 + $0x8] sm:$0xff pattern:$0x75316420] }
  0x50   : > { %695 = vrot.lane.b32.xlu1 %v691_v13, %s1258_s11  ;;  %776 = vst [vmem:[#allocation1] ss:$2 sm:$0xff] %v198_v0  ;;  %697 = vrot.lane.b32.xlu2 %v692_v14, %s1258_s11  ;;  %v1084_v13 = vld [vmem:[%s1537_s1 + $0x40] sm:$0xff] }
  0x57   : > { %v778_v15 = vld.sshfl [vmem:[#allocation1 + $0x8] sm:$0xff pattern:$0x75316420]  ;;  %v777_v16 = vld.sshfl [vmem:[#allocation1] sm:$0xff pattern:$0x75316420] }
  0x58   : > { %783 = vrot.lane.b32.xlu1 %v778_v15, %s1259_s12  ;;  %781 = vrot.lane.b32.xlu0 %v777_v16, %s1259_s12  ;;  %862 = vst [vmem:[#allocation1] ss:$2 sm:$0xff] %v198_v0  ;;  %v619_v0 = vperm.slane %v1092_v62, 0  ;;  %s978_s12 = scalar_lea.hbm %s1540_s4, %s1134_s8 }
  0x59   : > { %s981_s19 = sshll.u32 %s978_s12, 4  ;;  %s982_s19 = int_to_ptr.hbm [resolvable:$true] %s981_s19 }
  0x5a   : > { %s1203_s20 = sshra.s32 %s982_s19, 4  ;;  %s1204_s20 = int_to_ptr.hbm [resolvable:$true] %s1203_s20 }
  0x5b   : > { %s1205_s22 = scalar_lea.hbm %s1204_s20, 32  ;;  %p1210_p0 = scmp.lt.s32.totalorder %s1204_s20, %s1540_s4 }
  0x5c   : > { %p1206_p11 = scmp.ne.s32.totalorder %s1204_s20, %s1205_s22  ;;  %p1211_p1 = scmp.lt.s32.totalorder %s1209_s28, %s1205_s22 }
  0x5e   : > { %p1207_p12 = pnand %p1206_p11, %p1326_p5  ;;  %p1212_p2 = por %p1211_p1, %p1210_p0 }
  0x5f   : > { %v864_v17 = vld.sshfl [vmem:[#allocation1 + $0x8] sm:$0xff pattern:$0x75316420]  ;;  %v863_v18 = vld.sshfl [vmem:[#allocation1] sm:$0xff pattern:$0x75316420] }
  0x60   : > { %869 = vrot.lane.b32.xlu0 %v864_v17, %s1260_s13  ;;  %867 = vrot.lane.b32.xlu2 %v863_v18, %s1260_s13  ;;  %s979_s13 = sshll.u32 %s190_s9, 4  ;;  %p1208_p13 = pneg %p1207_p12  ;;  %s980_s13 = int_to_ptr.vmem [resolvable:$true] %s979_s13 }
  0x62   : > { %p1213_p3 = pnand %p1212_p2, %p1208_p13 }
  0x8a   : > { %v372_v20 = vpop.permute.xlu2 %371 }
  0x92   : > { %v206_v19 = vpop.permute.xlu1 %205 }
  0x93   : > { %v374_v28 = vpop.permute.xlu2 %373 }
  0x94   : > { %v376_v40 = vsel %vm375_vm2, %v372_v20, %v374_v28  ;;  %v377_v41 = vsel %vm375_vm2, %v374_v28, %v372_v20  ;;  %v1110_v20 = vld [vmem:[%s1539_s3 + $0xe] sm:$0x3] }
  0x95   : > { %v385_v48 = vmul.f32 %v381_v33, %v377_v41  ;;  %v386_v49 = vmul.f32 %v382_v37, %v376_v40  ;;  %v791_v21 = vperm.slane %v1110_v20, 0  ;;  %v1261_v33 = vmov 0  }
  0x96   : > { %1186 = vset.pattern.permute.xlu1 %v1261_v33  ;;  %1187 = vset.pattern.permute.xlu2 %v1261_v33 }
  0x97   : > { %1188 = vset.pattern.permute.xlu0 %v1261_v33 }
  0x9a   : > { %v230_v22 = vpop.permute.xlu0 %229  ;;  %v208_v27 = vpop.permute.xlu1 %207 }
  0x9b   : > { %v212_v34 = vsel %vm211_vm0, %v206_v19, %v208_v27  ;;  %v213_v35 = vsel %vm211_vm0, %v208_v27, %v206_v19  ;;  %v1077_v19 = vld [vmem:[%s1537_s1 + $0x38] sm:$0xff] }
  0x9c   : > { %v220_v44 = vmul.f32 %v216_v31, %v213_v35  ;;  %v221_v45 = vmul.f32 %v217_v32, %v212_v34  ;;  %v1093_v34 = vld [vmem:[%s1537_s1 + $0x50] sm:$0xff] }
  0x9d   : > { %v1119_v35 = vld [vmem:[%s1539_s3 + $0x10] sm:$0x3] }
  0x9e   : > { %v878_v37 = vperm.slane %v1119_v35, 1 }
  0xa2   : > { %v232_v36 = vpop.permute.xlu0 %231  ;;  %v610_v63 = vpop.permute.xlu2 %609 }
  0xa3   : > { %v234_v38 = vsel %vm233_vm1, %v230_v22, %v232_v36  ;;  %v235_v39 = vsel %vm233_vm1, %v232_v36, %v230_v22  ;;  %v792_v22 = vperm.slane %v1110_v20, 1  ;;  %v877_v36 = vperm.slane %v1119_v35, 0 }
  0xa4   : > { %v243_v42 = vmul.f32 %v239_v29, %v235_v39  ;;  %v244_v43 = vmul.f32 %v240_v30, %v234_v38  ;;  %v196_v29 = vld [vmem:[%s1538_s2] sm:$0xff]  ;;  %v197_v30 = vld [vmem:[%s1538_s2 + $0x8] sm:$0xff] }
  0xa5   : > { %950 = vperm.xlu1 %1186, %v196_v29   ;;  %955 = vperm.xlu2 %1187, %v197_v30   ;;  %v1102_v39 = vld [vmem:[%s1537_s1 + $0x60] sm:$0xff] }
  0xa6   : > { %1054 = vmatpush.msk.msra.mxu0 %vm255_vm3, %v243_v42  ;;  %1135 = vmatpush.msk.msra.mxu2 %vm255_vm3, %v243_v42 }
  0xa7   : > { %1057 = vmatpush.msk.msra.mxu1 %vm255_vm3, %v244_v43  ;;  %1136 = vmatpush.msk.msra.mxu3 %vm255_vm3, %v244_v43 }
  0xa8   : > { %1056 = vmatmul.msk.f32.vlgmr.msra.gmra.mxu2 %vm248_vm4, %v1053_v46  ;;  %1059 = vmatmul.msk.f32.vlgmr.msra.gmra.mxu3 %vm248_vm4, %v1053_v46  ;;  %v1111_v46 = vld [vmem:[%s1537_s1 + $0x70] sm:$0xff] }
  0xa9   : > { %1060 = vmatpush.msk.msrb.mxu2 %vm255_vm3, %v220_v44  ;;  %1063 = vmatpush.msk.msrb.mxu3 %vm255_vm3, %v221_v45  ;;  %v1103_v45 = vld [vmem:[%s1537_s1 + $0x68] sm:$0xff] }
  0xaa   : > { %1069 = vmatpush.msk.msrb.mxu0 %vm255_vm3, %v385_v48  ;;  %1072 = vmatpush.msk.msrb.mxu1 %vm255_vm3, %v386_v49  ;;  %v460_v53 = vpop.permute.xlu1 %459  ;;  %v458_v54 = vpop.permute.xlu0 %457  ;;  %v1112_v48 = vld [vmem:[%s1537_s1 + $0x78] sm:$0xff]  ;;  %v1121_v49 = vld [vmem:[%s1537_s1 + $0x88] sm:$0xff] }
  0xab   : > { %v462_v55 = vsel %vm461_vm5, %v458_v54, %v460_v53  ;;  %v463_v56 = vsel %vm461_vm5, %v460_v53, %v458_v54  ;;  %1055 = vmatmul.msk.f32.vlgmr.msra.gmra.mxu0 %vm248_vm4, %v1052_v52  ;;  %1058 = vmatmul.msk.f32.vlgmr.msra.gmra.mxu1 %vm248_vm4, %v1052_v52 }
  0xac   : > { %v471_v57 = vmul.f32 %v467_v50, %v463_v56  ;;  %v472_v58 = vmul.f32 %v468_v51, %v462_v55  ;;  %1086 = vmatpush.msk.msra.mxu0 %vm255_vm3, %v1343_v9  ;;  %1089 = vmatpush.msk.msra.mxu1 %vm255_vm3, %v1345_v10  ;;  %v1101_v9 = vld [vmem:[%s1539_s3 + $0xc] sm:$0x3]  ;;  %v698_v10 = vpop.permute.xlu2 %697 }
  0xad   : > { %v705_v11 = vperm.slane %v1101_v9, 0  ;;  %v706_v12 = vperm.slane %v1101_v9, 1 }
  0xae   : > { %1078 = vmatpush.msk.msra.mxu2 %vm255_vm3, %v471_v57  ;;  %1081 = vmatpush.msk.msra.mxu3 %vm255_vm3, %v472_v58 }
  0xb0   : > { %1061 = vmatmul.msk.f32.vlgmr.msrb.gmra.mxu2 %vm248_vm4, %v222_v59  ;;  %1064 = vmatmul.msk.f32.vlgmr.msrb.gmra.mxu3 %vm248_vm4, %v222_v59 }
  0xb3   : > { %1070 = vmatmul.msk.f32.vlgmr.msrb.gmra.mxu0 %vm248_vm4, %v1067_v60  ;;  %1073 = vmatmul.msk.f32.vlgmr.msrb.gmra.mxu1 %vm248_vm4, %v1067_v60 }
  0xb8   : > { %1062 = vmatmul.msk.f32.gmra.mxu2 %vm248_vm4, %v223_v61  ;;  %1065 = vmatmul.msk.f32.gmra.mxu3 %vm248_vm4, %v223_v61 }
  0xba   : > { %v612_v3 = vpop.permute.xlu0 %611  ;;  %v868_v38 = vpop.permute.xlu2 %867 }
  0xbb   : > { %v614_v4 = vsel %vm613_vm6, %v610_v63, %v612_v3  ;;  %v615_v5 = vsel %vm613_vm6, %v612_v3, %v610_v63  ;;  %1071 = vmatmul.msk.f32.gmra.mxu0 %vm248_vm4, %v1068_v2  ;;  %1074 = vmatmul.msk.f32.gmra.mxu1 %vm248_vm4, %v1068_v2 }
  0xbc   : > { %v623_v6 = vmul.f32 %v619_v0, %v614_v4  ;;  %v624_v7 = vmul.f32 %v620_v1, %v615_v5 }
  0xbe   : > { %1095 = vmatpush.msk.msrb.mxu2 %vm255_vm3, %v623_v6  ;;  %1098 = vmatpush.msk.msrb.mxu3 %vm255_vm3, %v624_v7 }
  0xc0   : > { %1079 = vmatmul.msk.f32.vlgmr.msra.gmra.mxu2 %vm248_vm4, %v1076_v8  ;;  %1082 = vmatmul.msk.f32.vlgmr.msra.gmra.mxu3 %vm248_vm4, %v1076_v8 }
  0xc2   : > { %v696_v14 = vpop.permute.xlu1 %695 }
  0xc3   : > { %v700_v15 = vsel %vm699_vm7, %v696_v14, %v698_v10  ;;  %v701_v16 = vsel %vm699_vm7, %v698_v10, %v696_v14  ;;  %1087 = vmatmul.msk.f32.vlgmr.msra.gmra.mxu0 %vm248_vm4, %v1084_v13  ;;  %1090 = vmatmul.msk.f32.vlgmr.msra.gmra.mxu1 %vm248_vm4, %v1084_v13 }
  0xc4   : > { %v709_v17 = vmul.f32 %v705_v11, %v700_v15  ;;  %v710_v18 = vmul.f32 %v706_v12, %v701_v16 }
  0xc6   : > { %1104 = vmatpush.msk.msrb.mxu0 %vm255_vm3, %v709_v17  ;;  %1107 = vmatpush.msk.msrb.mxu1 %vm255_vm3, %v710_v18 }
  0xc8   : > { %1080 = vmatmul.msk.f32.gmra.mxu2 %vm248_vm4, %v1077_v19  ;;  %1083 = vmatmul.msk.f32.gmra.mxu3 %vm248_vm4, %v1077_v19 }
  0xca   : > { %v784_v25 = vpop.permute.xlu1 %783  ;;  %v782_v26 = vpop.permute.xlu0 %781 }
  0xcb   : > { %v786_v27 = vsel %vm785_vm8, %v782_v26, %v784_v25  ;;  %v787_v28 = vsel %vm785_vm8, %v784_v25, %v782_v26  ;;  %1088 = vmatmul.msk.f32.gmra.mxu0 %vm248_vm4, %v1085_v24  ;;  %1091 = vmatmul.msk.f32.gmra.mxu1 %vm248_vm4, %v1085_v24 }
  0xcc   : > { %v795_v31 = vmul.f32 %v791_v21, %v786_v27  ;;  %v796_v32 = vmul.f32 %v792_v22, %v787_v28 }
  0xce   : > { %1113 = vmatpush.msk.msra.mxu2 %vm255_vm3, %v795_v31  ;;  %1116 = vmatpush.msk.msra.mxu3 %vm255_vm3, %v796_v32 }
  0xd0   : > { %1096 = vmatmul.msk.f32.vlgmr.msrb.gmra.mxu2 %vm248_vm4, %v1093_v34  ;;  %1099 = vmatmul.msk.f32.vlgmr.msrb.gmra.mxu3 %vm248_vm4, %v1093_v34 }
  0xd2   : > { %v870_v40 = vpop.permute.xlu0 %869 }
  0xd3   : > { %v872_v41 = vsel %vm871_vm9, %v868_v38, %v870_v40  ;;  %v873_v42 = vsel %vm871_vm9, %v870_v40, %v868_v38  ;;  %1105 = vmatmul.msk.f32.vlgmr.msrb.gmra.mxu0 %vm248_vm4, %v1102_v39  ;;  %1108 = vmatmul.msk.f32.vlgmr.msrb.gmra.mxu1 %vm248_vm4, %v1102_v39 }
  0xd4   : > { %v881_v43 = vmul.f32 %v877_v36, %v872_v41  ;;  %v882_v44 = vmul.f32 %v878_v37, %v873_v42 }
  0xd6   : > { %1122 = vmatpush.msk.msra.mxu0 %vm255_vm3, %v881_v43  ;;  %1125 = vmatpush.msk.msra.mxu1 %vm255_vm3, %v882_v44 }
  0xd8   : > { %1097 = vmatmul.msk.f32.gmra.mxu2 %vm248_vm4, %v1094_v23  ;;  %1100 = vmatmul.msk.f32.gmra.mxu3 %vm248_vm4, %v1094_v23 }
  0xdb   : > { %1106 = vmatmul.msk.f32.gmra.mxu0 %vm248_vm4, %v1103_v45  ;;  %1109 = vmatmul.msk.f32.gmra.mxu1 %vm248_vm4, %v1103_v45 }
  0xe0   : > { %1114 = vmatmul.msk.f32.vlgmr.msra.gmra.mxu2 %vm248_vm4, %v1111_v46  ;;  %1117 = vmatmul.msk.f32.vlgmr.msra.gmra.mxu3 %vm248_vm4, %v1111_v46 }
  0xe3   : > { %1123 = vmatmul.msk.f32.vlgmr.msra.gmra.mxu0 %vm248_vm4, %v1120_v47  ;;  %1126 = vmatmul.msk.f32.vlgmr.msra.gmra.mxu1 %vm248_vm4, %v1120_v47 }
  0xe8   : > { %1115 = vmatmul.msk.f32.gmra.mxu2 %vm248_vm4, %v1112_v48  ;;  %1118 = vmatmul.msk.f32.gmra.mxu3 %vm248_vm4, %v1112_v48 }
  0xeb   : > { %1124 = vmatmul.msk.f32.gmra.mxu0 %vm248_vm4, %v1121_v49  ;;  %1127 = vmatmul.msk.f32.gmra.mxu1 %vm248_vm4, %v1121_v49 }
 0x117   : > { %v951_v41 = vpop.permute.xlu1 %950 }
 0x128   : > { %v279_v50 = vpop.f32.mrf.mxu0  ;;  %v302_v51 = vpop.f32.mrf.mxu1 }
 0x12b   : > { %v282_v52 = vpop.f32.mrf.mxu2  ;;  %v305_v53 = vpop.f32.mrf.mxu3 }
 0x130   : > { %v419_v54 = vpop.f32.mrf.mxu0  ;;  %v442_v55 = vpop.f32.mrf.mxu1 }
 0x133   : > { %v337_v56 = vpop.f32.mrf.mxu2  ;;  %v360_v57 = vpop.f32.mrf.mxu3 }
 0x134   : > { %v338_v8 = vadd.f32 %v337_v56, %v279_v50  ;;  %v361_v9 = vadd.f32 %v360_v57, %v302_v51 }
 0x136   : > { %v448_v12 = vadd.f32 %v419_v54, %v338_v8  ;;  %v449_v13 = vadd.f32 %v442_v55, %v361_v9  ;;  %v956_v55 = vpop.permute.xlu2 %955 }
 0x138   : > { %v422_v58 = vpop.f32.mrf.mxu0  ;;  %v445_v59 = vpop.f32.mrf.mxu1 }
 0x13b   : > { %v340_v60 = vpop.f32.mrf.mxu2  ;;  %v363_v61 = vpop.f32.mrf.mxu3 }
 0x13c   : > { %v341_v18 = vadd.f32 %v340_v60, %v282_v52  ;;  %v364_v19 = vadd.f32 %v363_v61, %v305_v53 }
 0x13e   : > { %v450_v25 = vadd.f32 %v422_v58, %v341_v18  ;;  %v451_v26 = vadd.f32 %v445_v59, %v364_v19 }
 0x140   : > { %v571_v62 = vpop.f32.mrf.mxu0  ;;  %v594_v63 = vpop.f32.mrf.mxu1 }
 0x143   : > { %v505_v0 = vpop.f32.mrf.mxu2  ;;  %v528_v1 = vpop.f32.mrf.mxu3 }
 0x144   : > { %v534_v14 = vadd.f32 %v505_v0, %v448_v12  ;;  %v535_v15 = vadd.f32 %v528_v1, %v449_v13 }
 0x146   : > { %v600_v22 = vadd.f32 %v571_v62, %v534_v14  ;;  %v601_v24 = vadd.f32 %v594_v63, %v535_v15 }
 0x148   : > { %v574_v2 = vpop.f32.mrf.mxu0  ;;  %v597_v3 = vpop.f32.mrf.mxu1 }
 0x14b   : > { %v508_v4 = vpop.f32.mrf.mxu2  ;;  %v531_v5 = vpop.f32.mrf.mxu3 }
 0x14c   : > { %v536_v29 = vadd.f32 %v508_v4, %v450_v25  ;;  %v537_v30 = vadd.f32 %v531_v5, %v451_v26 }
 0x14e   : > { %v602_v37 = vadd.f32 %v574_v2, %v536_v29  ;;  %v603_v38 = vadd.f32 %v597_v3, %v537_v30 }
 0x150   : > { %v743_v6 = vpop.f32.mrf.mxu0  ;;  %v766_v7 = vpop.f32.mrf.mxu1 }
 0x153   : > { %v657_v10 = vpop.f32.mrf.mxu2  ;;  %v680_v11 = vpop.f32.mrf.mxu3 }
 0x154   : > { %v686_v27 = vadd.f32 %v657_v10, %v600_v22  ;;  %v687_v28 = vadd.f32 %v680_v11, %v601_v24 }
 0x156   : > { %v772_v33 = vadd.f32 %v743_v6, %v686_v27  ;;  %v773_v34 = vadd.f32 %v766_v7, %v687_v28 }
 0x158   : > { %v746_v16 = vpop.f32.mrf.mxu0  ;;  %v769_v17 = vpop.f32.mrf.mxu1 }
 0x15b   : > { %v660_v20 = vpop.f32.mrf.mxu2  ;;  %v683_v21 = vpop.f32.mrf.mxu3 }
 0x15c   : > { %v688_v42 = vadd.f32 %v660_v20, %v602_v37  ;;  %v689_v43 = vadd.f32 %v683_v21, %v603_v38 }
 0x15e   : > { %v774_v47 = vadd.f32 %v746_v16, %v688_v42  ;;  %v775_v48 = vadd.f32 %v769_v17, %v689_v43 }
 0x160   : > { %v915_v31 = vpop.f32.mrf.mxu0  ;;  %v938_v32 = vpop.f32.mrf.mxu1 }
 0x163   : > { %v829_v35 = vpop.f32.mrf.mxu2  ;;  %v852_v36 = vpop.f32.mrf.mxu3 }
 0x164   : > { %v858_v39 = vadd.f32 %v829_v35, %v772_v33  ;;  %v859_v40 = vadd.f32 %v852_v36, %v773_v34 }
 0x166   : > { %v944_v44 = vadd.f32 %v915_v31, %v858_v39  ;;  %v945_v23 = vadd.f32 %v938_v32, %v859_v40 }
 0x168   : > { %v958_v45 = vadd.f32 %v951_v41, %v944_v44  ;;  %v959_v46 = vadd.f32 %v951_v41, %v945_v23  ;;  %v918_v49 = vpop.f32.mrf.mxu0  ;;  %v941_v50 = vpop.f32.mrf.mxu1 }
 0x16a   : > { %962 = vst [vmem:[%s190_s9] sm:$0xff] %v958_v45 }
 0x16b   : > { %963 = vst [vmem:[%s190_s9 + $0x8] sm:$0xff] %v959_v46  ;;  %v832_v51 = vpop.f32.mrf.mxu2  ;;  %v855_v52 = vpop.f32.mrf.mxu3 }
 0x16c   : > { %v860_v53 = vadd.f32 %v832_v51, %v774_v47  ;;  %v861_v54 = vadd.f32 %v855_v52, %v775_v48 }
 0x16e   : > { %v946_v56 = vadd.f32 %v918_v49, %v860_v53  ;;  %v947_v57 = vadd.f32 %v941_v50, %v861_v54 }
 0x170   : > { %v960_v58 = vadd.f32 %v956_v55, %v946_v56  ;;  %v961_v59 = vadd.f32 %v956_v55, %v947_v57 }
 0x172   : > { %964 = vst [vmem:[%s190_s9 + $0x10] sm:$0xff] %v960_v58 }
 0x173   : > { %965 = vst [vmem:[%s190_s9 + $0x18] sm:$0xff] %v961_v59 }
 0x174   : > { %1216 = shalt.err (!%p1213_p3)
}
 0x175   : > { %s1262_s5 = smov 256  }
 0x176   : > { %1137 = dma.vmem_to_hbm [thread:$0]  (%p1326_p5), %s980_s13, 512, %s982_s19, %s967_s14, %s1262_s5, %s1262_s5, %s1254_s7  }
 0x177 PF: > { %p1143_p4 = scmp.ge.s32.totalorder %s1251_s18, 2  ;;  %s996_s6 = sand.u32 1, %s1239_s15  }
 0x178   : > { %s997_s8 = scalar_lea.sflag [#allocation3], %s996_s6 }
 0x179   : > { %p1140_p7 = pnand %p1143_p4, %p1330_p6 }
 0x17b   : > { %p1141_p8 = pneg %p1140_p7 }
 0x17d   : > { %1234 = dma.done.wait (%p1141_p8), %s997_s8, 512  }
 0x17e   : > { %1236 = vsyncadd (%p1141_p8), %s997_s8, 4294966784  ;;  %p14_p9 = scmp.ge.s32.totalorder %s1313_s21, 4   ;;  %s1543_s15 = smov %s1243_s16 }
 0x17f   : > { %s1544_s16 = smov %s1247_s17  ;;  %s1545_s17 = smov %s1324_s24 }
 0x180   : > { %s1546_s18 = smov %s1313_s21  ;;  %16 = sbr.rel (!%p14_p9) target bundleno = 3 (0x3), region = 86 }
 0x185   :  { %1003 = vsyncpa [#allocation3], 1 }
 0x186   :  { %1005 = vsyncpa [#allocation3 + $0x1], 1 }

</bundles_post_ra>
